<compile_context>
chip_gen: v7x
topology: tpu7x:2x2x1
jax: 0.10.0
libtpu: 0.0.40
codegen_flags: <defaults>
</compile_context>

<pallas_src>
import math
import jax
import jax.numpy as jnp
from jax.experimental import pallas as pl
from jax.experimental.pallas import tpu as pltpu


def _round_up(x, m):
    return ((x + m - 1) // m) * m


def critic_kernel(state_ref, action_ref,
                  w1_ref, b1_ref,
                  w2a_ref, w2h_ref, b2_ref,
                  wq_ref, bq_ref,
                  q_ref):
    # fc1 = relu(state @ W1 + b1)          (MXU, f32 accumulation; bias/relu in f32)
    h1 = jnp.dot(state_ref[...], w1_ref[...], preferred_element_type=jnp.float32)
    h1 = jnp.maximum(h1 + b1_ref[...], 0.0)

    # fc2 = relu(cat(action, fc1) @ W2 + b2)
    # concat folded into a split matmul: avoids an in-kernel XLU lane shuffle.
    h2 = jnp.dot(action_ref[...], w2a_ref[...], preferred_element_type=jnp.float32)
    h2 = h2 + jnp.dot(h1.astype(w2h_ref.dtype), w2h_ref[...],
                      preferred_element_type=jnp.float32)
    h2 = jnp.maximum(h2 + b2_ref[...], 0.0)

    # q = fc2 @ Wq + bq with out_features == 1:
    # an N=1 MXU matmul wastes 127/255 of the array and still costs a full
    # push/pop, so do it as a VPU multiply + XLU lane reduction instead.
    # wq_ref is stored as a (1, fc2) row vector -> broadcasts over the tile.
    q = jnp.sum(h2 * wq_ref[...], axis=-1, keepdims=True) + bq_ref[...]
    q_ref[...] = q.astype(q_ref.dtype)


def critic_forward(state, action, params, *, tile_b=512,
                   compute_dtype=jnp.float32):
    """state: [B, input_dim], action: [B, n_actions] -> q: [B, 1] (float32)."""
    (w1, b1, w2a, w2h, b2, wq, bq) = params
    B, input_dim = state.shape
    n_actions = action.shape[1]

    # Batch tile: multiple of 16 (bf16 sublane packing), no larger than the
    # (padded) batch. Per-row VMEM footprint is tiny, so the default 512 is
    # comfortably inside the scoped VMEM budget on v5e/v6e/v7x.
    tile_b = max(16, min(int(tile_b), _round_up(B, 16)))
    tile_b = _round_up(tile_b, 16)
    b_padded = _round_up(B, tile_b)
    grid_b = b_padded // tile_b

    if b_padded != B:
        pad = b_padded - B
        state = jnp.pad(state, ((0, pad), (0, 0)))
        action = jnp.pad(action, ((0, pad), (0, 0)))

    # Cast activations + weight matrices to the compute dtype (bf16 halves HBM
    # traffic on v6e/v7x). Biases stay f32; matmuls accumulate in f32 on the MXU.
    state_c = state.astype(compute_dtype)
    action_c = action.astype(compute_dtype)
    w1_c = w1.astype(compute_dtype)
    w2a_c = w2a.astype(compute_dtype)
    w2h_c = w2h.astype(compute_dtype)
    wq_c = wq.astype(compute_dtype)

    def act_spec(feat):
        # batch-tiled activation: new tile per grid step (double-buffered).
        return pl.BlockSpec((tile_b, feat), lambda i: (i, 0))

    def resident_spec(shape):
        # constant block index across the grid -> DMA'd once, stays in VMEM.
        return pl.BlockSpec(shape, lambda i: (0,) * len(shape))

    out = pl.pallas_call(
        critic_kernel,
        out_shape=jax.ShapeDtypeStruct((b_padded, 1), jnp.float32),
        grid=(grid_b,),
        in_specs=[
            act_spec(input_dim),          # state
            act_spec(n_actions),          # action
            resident_spec(w1_c.shape),    # W1
            resident_spec(b1.shape),      # b1
            resident_spec(w2a_c.shape),   # W2 (action part)
            resident_spec(w2h_c.shape),   # W2 (fc1 part)
            resident_spec(b2.shape),      # b2
            resident_spec(wq_c.shape),    # Wq (as (1, fc2) row)
            resident_spec(bq.shape),      # bq
        ],
        # Last dim 1 lowers to masked stores; acceptable here since the output
        # is tiny relative to the activation traffic.
        out_specs=pl.BlockSpec((tile_b, 1), lambda i: (i, 0)),
        compiler_params=pltpu.CompilerParams(
            dimension_semantics=("parallel",),        # megacore-shard the batch
            vmem_limit_bytes=32 * 1024 * 1024,        # explicit; safe on v5e/v6e/v7x
        ),
    )(state_c, action_c, w1_c, b1, w2a_c, w2h_c, b2, wq_c, bq)

    return out[:B]


def init_linear(key, fan_in, fan_out):
    """nn.Linear default init: U(-1/sqrt(fan_in), 1/sqrt(fan_in)).
    Returns weight as (fan_in, fan_out) (pre-transposed) and bias as (1, fan_out)."""
    kw, kb = jax.random.split(key)
    bound = 1.0 / math.sqrt(fan_in)
    w = jax.random.uniform(kw, (fan_in, fan_out), jnp.float32, -bound, bound)
    b = jax.random.uniform(kb, (1, fan_out), jnp.float32, -bound, bound)
    return w, b


def make_params(key, input_dim, fc1_dims, fc2_dims, n_actions):
    k1, k2, k3 = jax.random.split(key, 3)
    w1, b1 = init_linear(k1, input_dim, fc1_dims)
    # fc2 consumes concat([action, fc1]) -> fan_in = n_actions + fc1_dims
    w2_full, b2 = init_linear(k2, n_actions + fc1_dims, fc2_dims)
    w2a = w2_full[:n_actions, :]            # action slice of the concat
    w2h = w2_full[n_actions:, :]            # fc1 slice of the concat
    wq_col, bq = init_linear(k3, fc2_dims, 1)
    wq = wq_col.T                           # store as (1, fc2) row for the VPU reduce
    return (w1, b1, w2a, w2h, b2, wq, bq)


def reference_forward(state, action, params):
    (w1, b1, w2a, w2h, b2, wq, bq) = params
    h1 = jnp.maximum(state @ w1 + b1, 0.0)
    cat = jnp.concatenate([action, h1], axis=1)
    w2 = jnp.concatenate([w2a, w2h], axis=0)
    h2 = jnp.maximum(cat @ w2 + b2, 0.0)
    return h2 @ wq.T + bq


if __name__ == "__main__":
    # Small shapes consistent with the module: state dim 16, fc1=32, fc2=32,
    # n_actions=4, batch=8.
    B, INPUT_DIM, FC1, FC2, N_ACTIONS = 8, 16, 32, 32, 4

    key = jax.random.PRNGKey(0)
    kp, ks, ka = jax.random.split(key, 3)

    params = make_params(kp, INPUT_DIM, FC1, FC2, N_ACTIONS)
    state = jax.random.normal(ks, (B, INPUT_DIM), jnp.float32)
    action = jax.random.normal(ka, (B, N_ACTIONS), jnp.float32)

    q_ref = reference_forward(state, action, params)

    # f32 path (exact match).
    q = jax.block_until_ready(critic_forward(state, action, params))
    assert q.shape == (B, 1), q.shape
    assert jnp.allclose(q, q_ref, atol=1e-5, rtol=1e-5), (q, q_ref)

    # Multi-step grid + ragged batch (exercises padding / tiling path), f32.
    B2 = 300
    ks2, ka2 = jax.random.split(jax.random.PRNGKey(1))
    state2 = jax.random.normal(ks2, (B2, INPUT_DIM), jnp.float32)
    action2 = jax.random.normal(ka2, (B2, N_ACTIONS), jnp.float32)
    q2 = jax.block_until_ready(critic_forward(state2, action2, params, tile_b=64))
    q2_ref = reference_forward(state2, action2, params)
    assert q2.shape == (B2, 1), q2.shape
    assert jnp.allclose(q2, q2_ref, atol=1e-5, rtol=1e-5)

    # bf16 activation/weight path (halves HBM traffic on v6e/v7x); loose check.
    q_bf16 = jax.block_until_ready(
        critic_forward(state, action, params, compute_dtype=jnp.bfloat16))
    assert q_bf16.shape == (B, 1)
    assert jnp.allclose(q_bf16, q_ref, atol=2.5e-1, rtol=5e-2)

    print("KERNEL_OK")
</pallas_src>

<mosaic_0001>
module attributes {stable_mosaic.version = 11 : i64} {
  func.func @critic_kernel(%arg0: i32, %arg1: memref<16x16xf32, #tpu.memory_space<vmem>>, %arg2: memref<16x4xf32, #tpu.memory_space<vmem>>, %arg3: memref<16x32xf32, #tpu.memory_space<vmem>>, %arg4: memref<1x32xf32, #tpu.memory_space<vmem>>, %arg5: memref<4x32xf32, #tpu.memory_space<vmem>>, %arg6: memref<32x32xf32, #tpu.memory_space<vmem>>, %arg7: memref<1x32xf32, #tpu.memory_space<vmem>>, %arg8: memref<1x32xf32, #tpu.memory_space<vmem>>, %arg9: memref<1x1xf32, #tpu.memory_space<vmem>>, %arg10: memref<16x1xf32, #tpu.memory_space<vmem>>) attributes {dimension_semantics = [#tpu.dimension_semantics<parallel>], iteration_bounds = array<i64: 1>, scalar_prefetch = 0 : i64, scratch_operands = 0 : i64, tpu.core_type = #tpu.core_type<tc>, window_params = [{transform_indices = @transform_0, window_bounds = array<i64: 16, 16>}, {transform_indices = @transform_1, window_bounds = array<i64: 16, 4>}, {pipeline_mode = #tpu.pipeline_mode<synchronous>, transform_indices = @transform_2, window_bounds = array<i64: 16, 32>}, {pipeline_mode = #tpu.pipeline_mode<synchronous>, transform_indices = @transform_3, window_bounds = array<i64: 1, 32>}, {pipeline_mode = #tpu.pipeline_mode<synchronous>, transform_indices = @transform_4, window_bounds = array<i64: 4, 32>}, {pipeline_mode = #tpu.pipeline_mode<synchronous>, transform_indices = @transform_5, window_bounds = array<i64: 32, 32>}, {pipeline_mode = #tpu.pipeline_mode<synchronous>, transform_indices = @transform_6, window_bounds = array<i64: 1, 32>}, {pipeline_mode = #tpu.pipeline_mode<synchronous>, transform_indices = @transform_7, window_bounds = array<i64: 1, 32>}, {pipeline_mode = #tpu.pipeline_mode<synchronous>, transform_indices = @transform_8, window_bounds = array<i64: 1, 1>}, {transform_indices = @transform_9, window_bounds = array<i64: 16, 1>}]} {
    %c0 = arith.constant 0 : index
    %c0_0 = arith.constant 0 : index
    %0 = vector.load %arg1[%c0, %c0_0] : memref<16x16xf32, #tpu.memory_space<vmem>>, vector<16x16xf32>
    %c0_1 = arith.constant 0 : index
    %c0_2 = arith.constant 0 : index
    %1 = vector.load %arg3[%c0_1, %c0_2] : memref<16x32xf32, #tpu.memory_space<vmem>>, vector<16x32xf32>
    %cst = arith.constant dense<0.000000e+00> : vector<16x32xf32>
    %2 = tpu.matmul %0, %1, %cst {dimension_numbers = #tpu.dot_dimension_numbers<[1], [0], [0], [1], [0, 0, 1, 1], [], []>} : vector<16x16xf32>, vector<16x32xf32>, vector<16x32xf32> -> vector<16x32xf32>
    %c0_3 = arith.constant 0 : index
    %c0_4 = arith.constant 0 : index
    %3 = vector.load %arg4[%c0_3, %c0_4] : memref<1x32xf32, #tpu.memory_space<vmem>>, vector<1x32xf32>
    %4 = vector.broadcast %3 : vector<1x32xf32> to vector<16x32xf32>
    %5 = arith.addf %2, %4 : vector<16x32xf32>
    %cst_5 = arith.constant 0.000000e+00 : f32
    %6 = vector.broadcast %cst_5 : f32 to vector<16x32xf32>
    %7 = arith.maximumf %5, %6 : vector<16x32xf32>
    %c0_6 = arith.constant 0 : index
    %c0_7 = arith.constant 0 : index
    %8 = vector.load %arg2[%c0_6, %c0_7] : memref<16x4xf32, #tpu.memory_space<vmem>>, vector<16x4xf32>
    %c0_8 = arith.constant 0 : index
    %c0_9 = arith.constant 0 : index
    %9 = vector.load %arg5[%c0_8, %c0_9] : memref<4x32xf32, #tpu.memory_space<vmem>>, vector<4x32xf32>
    %cst_10 = arith.constant dense<0.000000e+00> : vector<16x32xf32>
    %10 = tpu.matmul %8, %9, %cst_10 {dimension_numbers = #tpu.dot_dimension_numbers<[1], [0], [0], [1], [0, 0, 1, 1], [], []>} : vector<16x4xf32>, vector<4x32xf32>, vector<16x32xf32> -> vector<16x32xf32>
    %c0_11 = arith.constant 0 : index
    %c0_12 = arith.constant 0 : index
    %11 = vector.load %arg6[%c0_11, %c0_12] : memref<32x32xf32, #tpu.memory_space<vmem>>, vector<32x32xf32>
    %cst_13 = arith.constant dense<0.000000e+00> : vector<16x32xf32>
    %12 = tpu.matmul %7, %11, %cst_13 {dimension_numbers = #tpu.dot_dimension_numbers<[1], [0], [0], [1], [0, 0, 1, 1], [], []>} : vector<16x32xf32>, vector<32x32xf32>, vector<16x32xf32> -> vector<16x32xf32>
    %13 = arith.addf %10, %12 : vector<16x32xf32>
    %c0_14 = arith.constant 0 : index
    %c0_15 = arith.constant 0 : index
    %14 = vector.load %arg7[%c0_14, %c0_15] : memref<1x32xf32, #tpu.memory_space<vmem>>, vector<1x32xf32>
    %15 = vector.broadcast %14 : vector<1x32xf32> to vector<16x32xf32>
    %16 = arith.addf %13, %15 : vector<16x32xf32>
    %cst_16 = arith.constant 0.000000e+00 : f32
    %17 = vector.broadcast %cst_16 : f32 to vector<16x32xf32>
    %18 = arith.maximumf %16, %17 : vector<16x32xf32>
    %c0_17 = arith.constant 0 : index
    %c0_18 = arith.constant 0 : index
    %19 = vector.load %arg8[%c0_17, %c0_18] : memref<1x32xf32, #tpu.memory_space<vmem>>, vector<1x32xf32>
    %20 = vector.broadcast %19 : vector<1x32xf32> to vector<16x32xf32>
    %21 = arith.mulf %18, %20 : vector<16x32xf32>
    %cst_19 = arith.constant dense<0.000000e+00> : vector<16xf32>
    %22 = vector.multi_reduction <add>, %21, %cst_19 [1] : vector<16x32xf32> to vector<16xf32>
    %23 = vector.shape_cast %22 : vector<16xf32> to vector<16x1xf32>
    %c0_20 = arith.constant 0 : index
    %c0_21 = arith.constant 0 : index
    %24 = vector.load %arg9[%c0_20, %c0_21] : memref<1x1xf32, #tpu.memory_space<vmem>>, vector<1x1xf32>
    %25 = vector.broadcast %24 : vector<1x1xf32> to vector<16x1xf32>
    %26 = arith.addf %23, %25 : vector<16x1xf32>
    %c0_22 = arith.constant 0 : index
    %c0_23 = arith.constant 0 : index
    %27 = vector.load %arg10[%c0_22, %c0_23] : memref<16x1xf32, #tpu.memory_space<vmem>>, vector<16x1xf32>
    tpu.vector_store %arg10[%c0_22, %c0_23], %26 {strides = array<i32>} : memref<16x1xf32, #tpu.memory_space<vmem>>, vector<16x1xf32>,
    return
  }
  func.func @transform_0(%arg0: i32) -> (i32, i32) {
    %c0_i32 = arith.constant 0 : i32
    %c0_i32_0 = arith.constant 0 : i32
    return %arg0, %c0_i32 : i32, i32
  }
  func.func @transform_1(%arg0: i32) -> (i32, i32) {
    %c0_i32 = arith.constant 0 : i32
    %c0_i32_0 = arith.constant 0 : i32
    return %arg0, %c0_i32 : i32, i32
  }
  func.func @transform_2(%arg0: i32) -> (i32, i32) {
    %c0_i32 = arith.constant 0 : i32
    %c0_i32_0 = arith.constant 0 : i32
    %c0_i32_1 = arith.constant 0 : i32
    return %c0_i32, %c0_i32_0 : i32, i32
  }
  func.func @transform_3(%arg0: i32) -> (i32, i32) {
    %c0_i32 = arith.constant 0 : i32
    %c0_i32_0 = arith.constant 0 : i32
    %c0_i32_1 = arith.constant 0 : i32
    return %c0_i32, %c0_i32_0 : i32, i32
  }
  func.func @transform_4(%arg0: i32) -> (i32, i32) {
    %c0_i32 = arith.constant 0 : i32
    %c0_i32_0 = arith.constant 0 : i32
    %c0_i32_1 = arith.constant 0 : i32
    return %c0_i32, %c0_i32_0 : i32, i32
  }
  func.func @transform_5(%arg0: i32) -> (i32, i32) {
    %c0_i32 = arith.constant 0 : i32
    %c0_i32_0 = arith.constant 0 : i32
    %c0_i32_1 = arith.constant 0 : i32
    return %c0_i32, %c0_i32_0 : i32, i32
  }
  func.func @transform_6(%arg0: i32) -> (i32, i32) {
    %c0_i32 = arith.constant 0 : i32
    %c0_i32_0 = arith.constant 0 : i32
    %c0_i32_1 = arith.constant 0 : i32
    return %c0_i32, %c0_i32_0 : i32, i32
  }
  func.func @transform_7(%arg0: i32) -> (i32, i32) {
    %c0_i32 = arith.constant 0 : i32
    %c0_i32_0 = arith.constant 0 : i32
    %c0_i32_1 = arith.constant 0 : i32
    return %c0_i32, %c0_i32_0 : i32, i32
  }
  func.func @transform_8(%arg0: i32) -> (i32, i32) {
    %c0_i32 = arith.constant 0 : i32
    %c0_i32_0 = arith.constant 0 : i32
    %c0_i32_1 = arith.constant 0 : i32
    return %c0_i32, %c0_i32_0 : i32, i32
  }
  func.func @transform_9(%arg0: i32) -> (i32, i32) {
    %c0_i32 = arith.constant 0 : i32
    %c0_i32_0 = arith.constant 0 : i32
    return %arg0, %c0_i32 : i32, i32
  }
}

</mosaic_0001>

<bundles_post_ra>
// kernel: tpu_custom_call.1
= control target key start
LH: loop header
LB: loop body
LE: loop exit
PB: predicated region body
PF: predicated region fallthrough
CT: control target
= control target key end

     0   :  { %s610_s0 = inlined_call_operand.hbm [shape: f32[16,16], index: 0, kind: input, shape index: {}]   ;;  %s611_s1 = inlined_call_operand.vmem [shape: f32[16,4], index: 1, kind: input, shape index: {}]   ;;  %s612_s2 = inlined_call_operand.hbm [shape: f32[16,32], index: 2, kind: input, shape index: {}]   ;;  %s613_s3 = inlined_call_operand.vmem [shape: f32[1,32], index: 3, kind: input, shape index: {}]   ;;  %s614_s4 = inlined_call_operand.vmem [shape: f32[4,32], index: 4, kind: input, shape index: {}]   ;;  %s615_s5 = inlined_call_operand.vmem [shape: f32[32,32], index: 5, kind: input, shape index: {}]   ;;  %s616_s6 = inlined_call_operand.vmem [shape: f32[1,32], index: 6, kind: input, shape index: {}]   ;;  %s617_s7 = inlined_call_operand.vmem [shape: f32[1,32], index: 7, kind: input, shape index: {}]   ;;  %s618_s8 = inlined_call_operand.<no memory space> [shape: f32[1,1], index: 8, kind: input, shape index: {}]   ;;  %s619_s9 = inlined_call_operand.vmem [shape: f32[16,1], index: 9, kind: output, shape index: {}]  }
   0x1   :  { %v14_v0 = vstv %s618_s8 }
   0x2   :  { %15 = vst [vmem:[#allocation2] sm:$0x1] %v14_v0 }
   0x3   :  { %16 = vsyncpa [#allocation4], 0 }
   0x4   :  { %17 = vsyncpa [#allocation6], 0  ;;  %s489_s11 = smov [#allocation3]   ;;  %s441_s15 = scalar_lea.hbm %s610_s0, 256 }
   0x5   :  { %s23_s12 = sshll.u32 %s489_s11, 4  ;;  %p442_p0 = scmp.ne.s32.totalorder %s610_s0, %s441_s15  ;;  %s24_s12 = int_to_ptr.vmem [resolvable:$true] %s23_s12 }
   0x6   :  { %p445_p1 = scmp.lt.u32.totalorder %s441_s15, %s610_s0 }
   0x8   :  { %p447_p2 = pnand %p445_p1, %p442_p0 }
   0xa   :  { %450 = shalt.err (!%p447_p2)
}
   0xb   :  { %s451_s8 = scalar_lea.vmem %s24_s12, 256  ;;  %p456_p4 = scmp.lt.s32.totalorder %s24_s12, %s24_s12 }
   0xc   :  { %p452_p3 = scmp.ne.s32.totalorder %s24_s12, %s451_s8  ;;  %p457_p5 = scmp.lt.s32.totalorder %s451_s8, %s451_s8 }
   0xe   :  { %p458_p6 = por %p457_p5, %p456_p4 }
  0x10   :  { %p459_p7 = pnand %p458_p6, %p452_p3 }
  0x12   :  { %462 = shalt.err (!%p459_p7)
}
  0x13   :  { %s490_s20 = smov 128   ;;  %s491_s21 = smov 8  }
  0x14   :  { %29 = dma.hbm_to_vmem [thread:$0]  %s610_s0, 256, %s24_s12, [#allocation4], %s490_s20, %s490_s20, %s491_s21  }
  0x15   :  { %s492_s24 = smov [#allocation5]   ;;  %s463_s28 = scalar_lea.hbm %s612_s2, 256 }
  0x16   :  { %s37_s25 = sshll.u32 %s492_s24, 4  ;;  %p464_p8 = scmp.ne.s32.totalorder %s612_s2, %s463_s28  ;;  %s38_s25 = int_to_ptr.vmem [resolvable:$true] %s37_s25 }
  0x17   :  { %p467_p9 = scmp.lt.u32.totalorder %s463_s28, %s612_s2 }
  0x19   :  { %p469_p10 = pnand %p467_p9, %p464_p8 }
  0x1b   :  { %472 = shalt.err (!%p469_p10)
}
  0x1c   :  { %s473_s13 = scalar_lea.vmem %s38_s25, 256  ;;  %p478_p12 = scmp.lt.s32.totalorder %s38_s25, %s38_s25 }
  0x1d   :  { %p474_p11 = scmp.ne.s32.totalorder %s38_s25, %s473_s13  ;;  %p479_p13 = scmp.lt.s32.totalorder %s473_s13, %s473_s13 }
  0x1f   :  { %p480_p0 = por %p479_p13, %p478_p12 }
  0x21   :  { %p481_p1 = pnand %p480_p0, %p474_p11 }
  0x23   :  { %484 = shalt.err (!%p481_p1)
}
  0x24   :  { %43 = dma.hbm_to_vmem [thread:$0]  %s612_s2, 256, %s38_s25, [#allocation6], %s490_s20, %s490_s20, %s491_s21  }
  0x25   :  { %485 = dma.done.wait [#allocation4], 256  }
  0x26   :  { %486 = vsyncadd [#allocation4], 4294967040 }
  0x27   :  { %487 = dma.done.wait [#allocation6], 256  }
  0x28   :  { %488 = vsyncadd [#allocation6], 4294967040  ;;  %vm73_vm0 = vcmask 130048   ;;  %v64_v1 = vld [vmem:[#allocation5] sm:$0xff]  ;;  %v65_v2 = vld [vmem:[#allocation5 + $0x8] sm:$0xff]  ;;  %vm253_vm1 = vcmask 1043456  }
  0x29   :  { %v62_v3 = vld [vmem:[#allocation3] sm:$0xff]  ;;  %v423_v4 = vpack.c.bf16 %v65_v2, %v64_v1  ;;  %v63_v8 = vld [vmem:[#allocation3 + $0x8] sm:$0xff]  ;;  %v163_v10 = vld [vmem:[%s615_s5 + $0x18] sm:$0xff]  ;;  %vm246_vm2 = vcmask 31744   ;;  %vm164_vm3 = vcmask 261120   ;;  %vm367_vm4 = vcmask 7168  }
  0x2a   :  { %404 = vmatprep.mubr.msk.f32.mxu0 %vm73_vm0, %v62_v3  ;;  %v160_v5 = vld [vmem:[%s615_s5] sm:$0xff]  ;;  %v161_v6 = vld [vmem:[%s615_s5 + $0x8] sm:$0xff]  ;;  %v162_v9 = vld [vmem:[%s615_s5 + $0x10] sm:$0xff] }
  0x2b   :  { %v427_v7 = vpack.c.bf16 %v161_v6, %v160_v5  ;;  %424 = vmatprep.subr.bf16.mxu0 %v423_v4  ;;  %v431_v11 = vpack.c.bf16 %v163_v10, %v162_v9  ;;  %v159_v12 = vld [vmem:[%s614_s4] sm:$0xf]  ;;  %v158_v14 = vld [vmem:[%s611_s1 + $0x8] sm:$0xff] }
  0x2c   :  { %426 = vmatpush3.bf16.msra.mxu0 %v423_v4  ;;  %v157_v13 = vld [vmem:[%s611_s1] sm:$0xff] }
  0x2d   :  { %428 = vmatprep.subr.bf16.mxu1 %v427_v7  ;;  %418 = vmatprep.subr.msk.mxu0 %vm253_vm1, %v159_v12  ;;  %v376_v15 = vld [vmem:[%s613_s3] ss:$0 sm:$0xff] }
  0x2e   :  { %430 = vmatpush3.bf16.msra.mxu1 %v427_v7  ;;  %v384_v25 = vld [vmem:[%s616_s6] ss:$0 sm:$0xff] }
  0x2f   :  { %405 = vmatmul.mubr.msk.f32.vlgmr.msra.gmra.mrb[0].mxu0 %vm73_vm0, %v63_v8  ;;  %432 = vmatprep.subr.bf16.mxu1 %v431_v11  ;;  %v385_v31 = vld [vmem:[%s617_s7] ss:$0 sm:$0xff] }
  0x30   :  { %419 = vmatpush3.msk.msra.mxu0 %vm253_vm1, %v159_v12  ;;  %420 = vmatprep.mubr.msk.f32.mxu0 %vm246_vm2, %v157_v13  ;;  %v386_v38 = vld [vmem:[#allocation2] ss:$0 sm:$0xff] }
  0x32   :  { %434 = vmatpush3.bf16.msra.mxu1 %v431_v11 }
  0x33   :  { %421 = vmatmul.mubr.msk.f32.vlgmr.msra.gmra.mrb[2].mxu0 %vm246_vm2, %v158_v14 }
 0x102   :  { %v406_v16 = vpop.f32.mrb[0].mxu0 }
 0x103   :  { %v152_v17 = vadd.f32 %v406_v16, %v376_v15  ;;  %v146_v18 = vpop.f32.mrb[1].mxu0 }
 0x104   :  { %v147_v19 = vadd.f32 %v376_v15, %v146_v18 }
 0x105   :  { %v156_v21 = vmax.f32 %v152_v17, 0.0 }
 0x106   :  { %v155_v20 = vmax.f32 %v147_v19, 0.0  ;;  %v422_v22 = vpop.f32.mrb[2].mxu0 }
 0x107   :  { %v323_v23 = vpop.f32.mrb[3].mxu0 }
 0x108   :  { %415 = vmatprep.mubr.msk.f32.mxu1 %vm164_vm3, %v155_v20 }
 0x109   :  { %416 = vmatmul.mubr.msk.f32.vlgmr.msra.gmra.mrb[0].mxu1 %vm164_vm3, %v156_v21 }
 0x1dc   :  { %v417_v24 = vpop.f32.mrb[0].mxu1 }
 0x1dd   :  { %v329_v26 = vadd.f32 %v422_v22, %v417_v24  ;;  %v237_v27 = vpop.f32.mrb[1].mxu1 }
 0x1de   :  { %v324_v28 = vadd.f32 %v323_v23, %v237_v27 }
 0x1df   :  { %v340_v29 = vadd.f32 %v384_v25, %v329_v26 }
 0x1e0   :  { %v339_v30 = vadd.f32 %v384_v25, %v324_v28 }
 0x1e1   :  { %v342_v32 = vmax.f32 %v340_v29, 0.0 }
 0x1e2   :  { %v341_v33 = vmax.f32 %v339_v30, 0.0 }
 0x1e3   :  { %v351_v36 = vmul.f32 %v385_v31, %v342_v32 }
 0x1e4   :  { %v350_v34 = vmul.f32 %v385_v31, %v341_v33 }
 0x1e5   :  { %v355_v37 = vsel %vm164_vm3, %v351_v36, 0.0 }
 0x1e6   :  { %v352_v35 = vsel %vm164_vm3, %v350_v34, 0.0 }
 0x1e7   :  { %353 = vadd.xlane.f32.xlu0 %v352_v35 }
 0x1eb   :  { %356 = vadd.xlane.f32.xlu0 %v355_v37 }
 0x274   :  { %v354_v39 = vpop.xlane.xlu0 %353 }
 0x275   :  { %v365_v40 = vadd.f32 %v386_v38, %v354_v39 }
 0x277   :  { %368 = vst.msk [vmem:[%s619_s9] sm:$0xff] %vm367_vm4, %v365_v40 }
 0x278   :  { %v357_v41 = vpop.xlane.xlu0 %356 }
 0x279   :  { %v366_v42 = vadd.f32 %v386_v38, %v357_v41 }
 0x27b   :  { %369 = vst.msk [vmem:[%s619_s9 + $0x8] sm:$0xff] %vm367_vm4, %v366_v42 }
 0x27c   :  { %374 = vsyncpa [#allocation4], 1 }
 0x27d   :  { %375 = vsyncpa [#allocation6], 1 }

</bundles_post_ra>
